<compile_context>
chip_gen: v5e
topology: v5e:2x2
jax: 0.10.0
libtpu: 0.0.40
codegen_flags: <defaults>
</compile_context>

<pallas_src>
import functools

import jax
import jax.numpy as jnp
from jax.experimental import pallas as pl
from jax.experimental.pallas import tpu as pltpu


def _masked_mse_kernel(pred_ref, label_ref, out_sum_ref, out_cnt_ref,
                       acc_sum, acc_cnt, *, row_tile, total_rows,
                       blocks_per_core):
    c = pl.program_id(0)   # "core" axis (parallel)
    j = pl.program_id(1)   # row-block axis (reduction, arbitrary)

    @pl.when(j == 0)
    def _():
        acc_sum[...] = jnp.zeros_like(acc_sum)
        acc_cnt[...] = jnp.zeros_like(acc_cnt)

    pred = pred_ref[...].astype(jnp.float32)
    label = label_ref[...].astype(jnp.float32)

    # Global row index of each element in this block (computed from the
    # *unclamped* block index) masks rows past the true end of the array:
    # covers both the partial last block and "virtual" clamped blocks.
    start_row = (c * blocks_per_core + j) * row_tile
    row_ids = jax.lax.broadcasted_iota(jnp.int32, pred.shape, 0) + start_row
    valid = jnp.logical_and(jnp.logical_not(jnp.isnan(label)),
                            row_ids < total_rows)

    # Single select kills NaN/garbage lanes before any arithmetic leaks.
    diff = jnp.where(valid, pred - label, 0.0)

    # Per-step reduction along sublanes into tiny (1, lane) accumulators:
    # one VALU add per input vreg, negligible accumulator traffic.
    acc_sum[...] += jnp.sum(diff * diff, axis=0, keepdims=True)
    acc_cnt[...] += jnp.sum(valid.astype(jnp.int32), axis=0, keepdims=True)

    @pl.when(j == pl.num_programs(1) - 1)
    def _():
        out_sum_ref[...] = jnp.sum(acc_sum[...]).reshape(1, 1, 1)
        out_cnt_ref[...] = jnp.sum(acc_cnt[...]).reshape(1, 1, 1)


def custom_loss(pred, label, platten=False, target_block_elems=1024 * 1024,
                num_cores=2):
    """Masked-mean MSE loss (CustomLoss with criterion=MSELoss)."""
    if platten:  # pure reshape glue; result is identical since we flatten anyway
        pred = pred.reshape((-1,) + pred.shape[2:])
        label = label.reshape((-1,) + label.shape[2:])
    assert pred.shape == label.shape

    flat_p = pred.reshape(-1)
    flat_l = label.reshape(-1)
    t = flat_p.shape[0]

    # Lane-dense layout: widest lane count (multiple of 128) dividing the
    # element count -> the reshape below is a free, copy-less view.
    lane = None
    for cand in (1024, 512, 256, 128):
        if t % cand == 0:
            lane = cand
            break
    if lane is None:
        # TODO(synk): rare path (element count not a multiple of 128) — pad a
        # tiny NaN tail; XLA materializes the concat (one extra copy).
        lane = 128
        pad = (-t) % lane
        flat_p = jnp.concatenate([flat_p, jnp.zeros((pad,), flat_p.dtype)])
        flat_l = jnp.concatenate([flat_l, jnp.full((pad,), jnp.nan, flat_l.dtype)])

    rows = flat_p.shape[0] // lane
    p2 = flat_p.reshape(rows, lane)
    l2 = flat_l.reshape(rows, lane)

    # Row tile: ~4 MiB f32 blocks per input; multiple of 16 rows when tiling
    # (8/128 rule + clean packed-bf16 sublanes), or the full row count for
    # small inputs (full-extent blocks are always legal).
    row_tile = min(max(target_block_elems // lane, 16), rows)
    if row_tile < rows:
        row_tile = max((row_tile // 16) * 16, 16)
    n_blocks = pl.cdiv(rows, row_tile)
    bpc = pl.cdiv(n_blocks, num_cores)  # row-blocks per "core"

    kernel = functools.partial(
        _masked_mse_kernel,
        row_tile=row_tile, total_rows=rows, blocks_per_core=bpc)

    def in_map(c, j):
        # Clamp so "virtual" blocks past the end re-read the last real block;
        # their contribution is zeroed by the in-kernel row mask.
        return (jnp.minimum(c * bpc + j, n_blocks - 1), 0)

    out_sum, out_cnt = pl.pallas_call(
        kernel,
        out_shape=(
            jax.ShapeDtypeStruct((num_cores, 1, 1), jnp.float32),
            jax.ShapeDtypeStruct((num_cores, 1, 1), jnp.int32),
        ),
        grid_spec=pltpu.PrefetchScalarGridSpec(
            num_scalar_prefetch=0,
            grid=(num_cores, bpc),
            in_specs=[
                pl.BlockSpec((row_tile, lane), in_map),
                pl.BlockSpec((row_tile, lane), in_map),
            ],
            out_specs=[
                pl.BlockSpec((1, 1, 1), lambda c, j: (c, 0, 0)),
                pl.BlockSpec((1, 1, 1), lambda c, j: (c, 0, 0)),
            ],
            scratch_shapes=[
                pltpu.VMEM((1, lane), jnp.float32),
                pltpu.VMEM((1, lane), jnp.int32),
            ],
        ),
        compiler_params=pltpu.CompilerParams(
            dimension_semantics=("parallel", "arbitrary"),
            vmem_limit_bytes=32 * 1024 * 1024,
        ),
    )(p2, l2)

    # Combine per-core partials and do the final divide in the wrapper.
    return jnp.sum(out_sum) / jnp.sum(out_cnt)


def _reference(pred, label):
    valid = jnp.logical_not(jnp.isnan(label))
    sq = (pred - jnp.where(valid, label, 0.0)) ** 2
    return jnp.sum(jnp.where(valid, sq, 0.0)) / jnp.sum(valid)


if __name__ == "__main__":
    key = jax.random.PRNGKey(0)
    kp, kl, kp2, kl2 = jax.random.split(key, 4)

    # Test 1: the module's typical (batch, seq, hidden) input with platten=True.
    B, S, H = 2, 8, 32
    pred = jax.random.normal(kp, (B, S, H), dtype=jnp.float32)
    label = jax.random.normal(kl, (B, S, H), dtype=jnp.float32)
    nan_mask = (jnp.arange(B * S * H).reshape(B, S, H) % 7) == 0
    label = jnp.where(nan_mask, jnp.nan, label)

    loss = custom_loss(pred, label, platten=True)
    jax.block_until_ready(loss)
    ref = _reference(pred, label)
    assert jnp.allclose(loss, ref, rtol=1e-5, atol=1e-6), (loss, ref)

    # Test 2: small shape that exercises multi-block accumulation, the partial
    # last block, and the clamped/masked "virtual" block on the 2nd core axis.
    pred2 = jax.random.normal(kp2, (2, 3, 704), dtype=jnp.float32)
    label2 = jax.random.normal(kl2, (2, 3, 704), dtype=jnp.float32)
    nan_mask2 = (jnp.arange(pred2.size).reshape(pred2.shape) % 5) == 0
    label2 = jnp.where(nan_mask2, jnp.nan, label2)

    loss2 = custom_loss(pred2, label2, platten=False,
                        target_block_elems=16 * 128)
    jax.block_until_ready(loss2)
    ref2 = _reference(pred2, label2)
    assert jnp.allclose(loss2, ref2, rtol=1e-5, atol=1e-6), (loss2, ref2)

    print("KERNEL_OK")
</pallas_src>

<mosaic_0001>
module attributes {stable_mosaic.version = 11 : i64} {
  func.func @_masked_mse_kernel(%arg0: i32, %arg1: i32, %arg2: memref<1x512xf32, #tpu.memory_space<vmem>>, %arg3: memref<1x512xf32, #tpu.memory_space<vmem>>, %arg4: memref<1x1x1xf32, #tpu.memory_space<vmem>>, %arg5: memref<1x1x1xi32, #tpu.memory_space<vmem>>, %arg6: memref<1x512xf32, #tpu.memory_space<vmem>>, %arg7: memref<1x512xi32, #tpu.memory_space<vmem>>) attributes {dimension_semantics = [#tpu.dimension_semantics<parallel>, #tpu.dimension_semantics<arbitrary>], iteration_bounds = array<i64: 2, 1>, scalar_prefetch = 0 : i64, scratch_operands = 2 : i64, tpu.core_type = #tpu.core_type<tc>, window_params = [{transform_indices = @transform_0, window_bounds = array<i64: 1, 512>}, {transform_indices = @transform_1, window_bounds = array<i64: 1, 512>}, {transform_indices = @transform_2, window_bounds = array<i64: 1, 1, 1>}, {transform_indices = @transform_3, window_bounds = array<i64: 1, 1, 1>}]} {
    %c0_i32 = arith.constant 0 : i32
    %0 = arith.cmpi eq, %arg1, %c0_i32 : i32
    %1 = arith.extui %0 : i1 to i32
    %c0_i32_0 = arith.constant 0 : i32
    %2 = arith.cmpi ne, %1, %c0_i32_0 : i32
    scf.if %2 {
      %cst_19 = arith.constant 0.000000e+00 : f32
      %34 = vector.broadcast %cst_19 : f32 to vector<1x512xf32>
      %c0_20 = arith.constant 0 : index
      %c0_21 = arith.constant 0 : index
      %35 = vector.load %arg6[%c0_20, %c0_21] : memref<1x512xf32, #tpu.memory_space<vmem>>, vector<1x512xf32>
      tpu.vector_store %arg6[%c0_20, %c0_21], %34 {strides = array<i32>} : memref<1x512xf32, #tpu.memory_space<vmem>>, vector<1x512xf32>,
      %c0_i32_22 = arith.constant 0 : i32
      %36 = vector.broadcast %c0_i32_22 : i32 to vector<1x512xi32>
      %c0_23 = arith.constant 0 : index
      %c0_24 = arith.constant 0 : index
      %37 = vector.load %arg7[%c0_23, %c0_24] : memref<1x512xi32, #tpu.memory_space<vmem>>, vector<1x512xi32>
      tpu.vector_store %arg7[%c0_23, %c0_24], %36 {strides = array<i32>} : memref<1x512xi32, #tpu.memory_space<vmem>>, vector<1x512xi32>,
    } else {
    }
    %c0 = arith.constant 0 : index
    %c0_1 = arith.constant 0 : index
    %3 = vector.load %arg2[%c0, %c0_1] : memref<1x512xf32, #tpu.memory_space<vmem>>, vector<1x512xf32>
    %c0_2 = arith.constant 0 : index
    %c0_3 = arith.constant 0 : index
    %4 = vector.load %arg3[%c0_2, %c0_3] : memref<1x512xf32, #tpu.memory_space<vmem>>, vector<1x512xf32>
    %c1_i32 = arith.constant 1 : i32
    %5 = arith.muli %arg0, %c1_i32 : i32
    %6 = arith.addi %5, %arg1 : i32
    %c1_i32_4 = arith.constant 1 : i32
    %7 = arith.muli %6, %c1_i32_4 : i32
    %8 = tpu.iota {dimensions = array<i32: 0>} : vector<1x512xi32>
    %9 = vector.broadcast %7 : i32 to vector<1x512xi32>
    %10 = arith.addi %8, %9 : vector<1x512xi32>
    %11 = arith.cmpf one, %4, %4 : vector<1x512xf32>
    %cst = arith.constant dense<true> : vector<1x512xi1>
    %12 = arith.xori %11, %cst : vector<1x512xi1>
    %c1_i32_5 = arith.constant 1 : i32
    %13 = vector.broadcast %c1_i32_5 : i32 to vector<1x512xi32>
    %14 = arith.cmpi slt, %10, %13 : vector<1x512xi32>
    %15 = arith.andi %12, %14 : vector<1x512xi1>
    %16 = arith.subf %3, %4 : vector<1x512xf32>
    %cst_6 = arith.constant 0.000000e+00 : f32
    %17 = vector.broadcast %cst_6 : f32 to vector<1x512xf32>
    %18 = arith.select %15, %16, %17 : vector<1x512xi1>, vector<1x512xf32>
    %c0_7 = arith.constant 0 : index
    %c0_8 = arith.constant 0 : index
    %19 = vector.load %arg6[%c0_7, %c0_8] : memref<1x512xf32, #tpu.memory_space<vmem>>, vector<1x512xf32>
    %20 = arith.mulf %18, %18 : vector<1x512xf32>
    %cst_9 = arith.constant dense<0.000000e+00> : vector<512xf32>
    %21 = vector.multi_reduction <add>, %20, %cst_9 [0] : vector<1x512xf32> to vector<512xf32>
    %22 = vector.shape_cast %21 : vector<512xf32> to vector<1x512xf32>
    %23 = arith.addf %19, %22 : vector<1x512xf32>
    %c0_10 = arith.constant 0 : index
    %c0_11 = arith.constant 0 : index
    %24 = vector.load %arg6[%c0_10, %c0_11] : memref<1x512xf32, #tpu.memory_space<vmem>>, vector<1x512xf32>
    tpu.vector_store %arg6[%c0_10, %c0_11], %23 {strides = array<i32>} : memref<1x512xf32, #tpu.memory_space<vmem>>, vector<1x512xf32>,
    %c0_12 = arith.constant 0 : index
    %c0_13 = arith.constant 0 : index
    %25 = vector.load %arg7[%c0_12, %c0_13] : memref<1x512xi32, #tpu.memory_space<vmem>>, vector<1x512xi32>
    %26 = arith.extui %15 : vector<1x512xi1> to vector<1x512xi32>
    %cst_14 = arith.constant dense<0> : vector<512xi32>
    %27 = vector.multi_reduction <add>, %26, %cst_14 [0] : vector<1x512xi32> to vector<512xi32>
    %28 = vector.shape_cast %27 : vector<512xi32> to vector<1x512xi32>
    %29 = arith.addi %25, %28 : vector<1x512xi32>
    %c0_15 = arith.constant 0 : index
    %c0_16 = arith.constant 0 : index
    %30 = vector.load %arg7[%c0_15, %c0_16] : memref<1x512xi32, #tpu.memory_space<vmem>>, vector<1x512xi32>
    tpu.vector_store %arg7[%c0_15, %c0_16], %29 {strides = array<i32>} : memref<1x512xi32, #tpu.memory_space<vmem>>, vector<1x512xi32>,
    %c0_i32_17 = arith.constant 0 : i32
    %31 = arith.cmpi eq, %arg1, %c0_i32_17 : i32
    %32 = arith.extui %31 : i1 to i32
    %c0_i32_18 = arith.constant 0 : i32
    %33 = arith.cmpi ne, %32, %c0_i32_18 : i32
    scf.if %33 {
      %c0_19 = arith.constant 0 : index
      %c0_20 = arith.constant 0 : index
      %34 = vector.load %arg6[%c0_19, %c0_20] : memref<1x512xf32, #tpu.memory_space<vmem>>, vector<1x512xf32>
      %35 = vector.shape_cast %34 : vector<1x512xf32> to vector<1x1x512xf32>
      %cst_21 = arith.constant dense<0.000000e+00> : vector<1xf32>
      %36 = vector.multi_reduction <add>, %35, %cst_21 [1, 2] : vector<1x1x512xf32> to vector<1xf32>
      %37 = vector.shape_cast %36 : vector<1xf32> to vector<1x1x1xf32>
      %38 = vector.extract %37[0, 0, 0] : f32 from vector<1x1x1xf32>
      %39 = vector.broadcast %38 : f32 to vector<1x1x1xf32>
      %c0_22 = arith.constant 0 : index
      %c0_23 = arith.constant 0 : index
      %c0_24 = arith.constant 0 : index
      %40 = vector.load %arg4[%c0_22, %c0_23, %c0_24] : memref<1x1x1xf32, #tpu.memory_space<vmem>>, vector<1x1x1xf32>
      tpu.vector_store %arg4[%c0_22, %c0_23, %c0_24], %39 {strides = array<i32>} : memref<1x1x1xf32, #tpu.memory_space<vmem>>, vector<1x1x1xf32>,
      %c0_25 = arith.constant 0 : index
      %c0_26 = arith.constant 0 : index
      %41 = vector.load %arg7[%c0_25, %c0_26] : memref<1x512xi32, #tpu.memory_space<vmem>>, vector<1x512xi32>
      %42 = vector.shape_cast %41 : vector<1x512xi32> to vector<1x1x512xi32>
      %cst_27 = arith.constant dense<0> : vector<1xi32>
      %43 = vector.multi_reduction <add>, %42, %cst_27 [1, 2] : vector<1x1x512xi32> to vector<1xi32>
      %44 = vector.shape_cast %43 : vector<1xi32> to vector<1x1x1xi32>
      %45 = vector.extract %44[0, 0, 0] : i32 from vector<1x1x1xi32>
      %46 = vector.broadcast %45 : i32 to vector<1x1x1xi32>
      %c0_28 = arith.constant 0 : index
      %c0_29 = arith.constant 0 : index
      %c0_30 = arith.constant 0 : index
      %47 = vector.load %arg5[%c0_28, %c0_29, %c0_30] : memref<1x1x1xi32, #tpu.memory_space<vmem>>, vector<1x1x1xi32>
      tpu.vector_store %arg5[%c0_28, %c0_29, %c0_30], %46 {strides = array<i32>} : memref<1x1x1xi32, #tpu.memory_space<vmem>>, vector<1x1x1xi32>,
    } else {
    }
    return
  }
  func.func @transform_0(%arg0: i32, %arg1: i32) -> (i32, i32) {
    %c1_i32 = arith.constant 1 : i32
    %0 = arith.muli %arg0, %c1_i32 : i32
    %1 = arith.addi %0, %arg1 : i32
    %c0_i32 = arith.constant 0 : i32
    %2 = arith.minsi %1, %c0_i32 : i32
    %c0_i32_0 = arith.constant 0 : i32
    %c0_i32_1 = arith.constant 0 : i32
    return %2, %c0_i32_0 : i32, i32
  }
  func.func @transform_1(%arg0: i32, %arg1: i32) -> (i32, i32) {
    %c1_i32 = arith.constant 1 : i32
    %0 = arith.muli %arg0, %c1_i32 : i32
    %1 = arith.addi %0, %arg1 : i32
    %c0_i32 = arith.constant 0 : i32
    %2 = arith.minsi %1, %c0_i32 : i32
    %c0_i32_0 = arith.constant 0 : i32
    %c0_i32_1 = arith.constant 0 : i32
    return %2, %c0_i32_0 : i32, i32
  }
  func.func @transform_2(%arg0: i32, %arg1: i32) -> (i32, i32, i32) {
    %c0_i32 = arith.constant 0 : i32
    %c0_i32_0 = arith.constant 0 : i32
    %c0_i32_1 = arith.constant 0 : i32
    return %arg0, %c0_i32, %c0_i32_0 : i32, i32, i32
  }
  func.func @transform_3(%arg0: i32, %arg1: i32) -> (i32, i32, i32) {
    %c0_i32 = arith.constant 0 : i32
    %c0_i32_0 = arith.constant 0 : i32
    %c0_i32_1 = arith.constant 0 : i32
    return %arg0, %c0_i32, %c0_i32_0 : i32, i32, i32
  }
}

</mosaic_0001>

<bundles_post_ra>
// kernel: tpu_custom_call.1
= control target key start
LH: loop header
LB: loop body
LE: loop exit
PB: predicated region body
PF: predicated region fallthrough
CT: control target
= control target key end

     0   :  { %9 = vsyncpa [#allocation5], 0  ;;  %s835_s0 = inlined_call_operand.hbm [shape: f32[1,512], index: 0, kind: input, shape index: {}]   ;;  %s836_s1 = inlined_call_operand.hbm [shape: f32[1,512], index: 1, kind: input, shape index: {}]   ;;  %s837_s2 = inlined_call_operand.vmem [shape: f32[2,1,1], index: 2, kind: output, shape index: {0}]   ;;  %s838_s3 = inlined_call_operand.vmem [shape: s32[2,1,1], index: 3, kind: output, shape index: {1}]  }
   0x1   :  { %11 = vsyncpa [#allocation5 + $0x1], 0 }
   0x2   :  { %12 = vsyncpa [#allocation7], 0 }
   0x3   :  { %14 = vsyncpa [#allocation7 + $0x1], 0  ;;  %s708_s12 = smov 0   ;;  %s710_s13 = smov 0  }
   0x4   :  { %s712_s14 = smov 0   ;;  %s714_s15 = smov 0  }
   0x5   :  { %s716_s16 = smov 0  }
   0x6 LB: > { %s490_s17 = sadd.s32 4294967295, %s681_s16   ;;  %s32_s18 = sadd.s32 1, %s677_s15  ;;  %s681_s16 = sphi %s716_s16, %s20_s16   ;;  %s677_s15 = sphi %s714_s15, %s846_s15   ;;  %s673_s14 = sphi %s712_s14, %s845_s14   ;;  %s669_s13 = sphi %s710_s13, %s825_s13   ;;  %s665_s12 = sphi %s708_s12, %s844_s12  }
   0x7   : > { %p34_p0 = scmp.ge.s32.totalorder %s32_s18, 2  ;;  %p662_p1 = scmp.ne.s32.totalorder %s669_s13, 0 }
   0x8   : > { %p53_p2 = scmp.eq.s32.totalorder %s681_s16, 0  ;;  %p58_p3 = scmp.ne.s32.totalorder %s669_s13, %s665_s12 }
   0x9   : > { %s848_s18 = smov (%p34_p0, %s32_s18), 0  ;;  %p59_p4 = scmp.eq.s32.totalorder %s490_s17, 0 }
   0xa   : > { %p54_p5 = por %p662_p1, %p53_p2  ;;  %p518_p7 = scmp.lt.s32.totalorder %s681_s16, 2 }
   0xb   : > { %p738_p6 = por %p59_p4, %p58_p3  ;;  %s179_s22 = sshll.u32 %s835_s0, 4  ;;  %s180_s22 = int_to_ptr.hbm [resolvable:$true] %s179_s22 }
   0xc   : > { %s683_s23 = smov [#allocation4]   ;;  %p746_p8 = pnand %p518_p7, %p54_p5 }
   0xd   : > { %s181_s24 = sshll.u32 %s683_s23, 4  ;;  %p498_p9 = scmp.ge.s32.totalorder %s681_s16, 1  ;;  %s182_s24 = int_to_ptr.vmem [resolvable:$true] %s181_s24 }
   0xe   : > { %p208_p10 = scmp.lt.s32.totalorder %s681_s16, 3  ;;  %s570_s26 = sshra.s32 %s180_s22, 4  ;;  %s571_s26 = int_to_ptr.hbm [resolvable:$true] %s570_s26 }
   0xf   : > { %s572_s27 = scalar_lea.hbm %s571_s26, 4  ;;  %p574_p12 = pneg %p746_p8 }
  0x10   : > { %p573_p11 = scmp.ne.s32.totalorder %s571_s26, %s572_s27  ;;  %s577_s30 = scalar_lea.hbm %s835_s0, 4 }
  0x11   : > { %p579_p1 = scmp.lt.s32.totalorder %s577_s30, %s572_s27 }
  0x12   : > { %p575_p13 = pnand %p574_p12, %p573_p11 }
  0x14   : > { %p576_p0 = pneg %p575_p13 }
  0x16   : > { %p581_p2 = pnand %p579_p1, %p576_p0 }
  0x18   : > { %584 = shalt.err (!%p581_p2)
}
  0x19   : > { %514 = dma.hbm_to_vmem [thread:$0]  (!%p746_p8), %s180_s22, 64, %s182_s24, [#allocation5]  }
  0x1a   : > { %p766_p3 = pnand %p498_p9, %p208_p10  ;;  %s201_s7 = sshll.u32 %s836_s1, 4  ;;  %s202_s7 = int_to_ptr.hbm [resolvable:$true] %s201_s7 }
  0x1b   : > { %s684_s8 = smov [#allocation6]   ;;  %s600_s10 = sshra.s32 %s202_s7, 4  ;;  %s601_s10 = int_to_ptr.hbm [resolvable:$true] %s600_s10 }
  0x1c   : > { %s203_s9 = sshll.u32 %s684_s8, 4  ;;  %s602_s11 = scalar_lea.hbm %s601_s10, 4  ;;  %s204_s9 = int_to_ptr.vmem [resolvable:$true] %s203_s9 }
  0x1d   : > { %p603_p4 = scmp.ne.s32.totalorder %s601_s10, %s602_s11  ;;  %s607_s20 = scalar_lea.hbm %s836_s1, 4 }
  0x1e   : > { %p609_p9 = scmp.lt.s32.totalorder %s607_s20, %s602_s11 }
  0x1f   : > { %p605_p5 = pnand %p603_p4, %p574_p12 }
  0x21   : > { %p606_p7 = pneg %p605_p5 }
  0x23   : > { %p611_p10 = pnand %p609_p9, %p606_p7 }
  0x25   : > { %614 = shalt.err (!%p611_p10)
}
  0x26   : > { %517 = dma.hbm_to_vmem [thread:$0]  (!%p746_p8), %s202_s7, 64, %s204_s9, [#allocation7]  }
  0x27   : > { %212 = sbr.rel (%p766_p3) target bundleno = 273 (0x111), region = 28  ;;  %s214_s21 = sand.u32 (!%p766_p3), 1, %s669_s13  }
  0x28   : > { %s499_s22 = sshll.u32 (!%p766_p3), %s214_s21, 2  ;;  %s215_s23 = scalar_lea.sflag (!%p766_p3), [#allocation5], %s214_s21 }
  0x29   : > { %s218_s24 = scalar_lea.vmem (!%p766_p3), [#allocation4], %s499_s22 }
  0x2c   : > { %655 = dma.done.wait (%p738_p6), %s215_s23, 64  }
  0x2d   : > { %657 = vsyncadd (%p738_p6), %s215_s23, 4294967232  ;;  %s225_s26 = scalar_lea.sflag [#allocation7], %s214_s21  ;;  %s228_s27 = scalar_lea.vmem [#allocation6], %s499_s22 }
  0x2e   : > { %659 = dma.done.wait (%p738_p6), %s225_s26, 64  }
  0x2f   : > { %661 = vsyncadd (%p738_p6), %s225_s26, 4294967232  ;;  %v274_v0 = vlaneseq  ;;  %v285_v1 = vstv %s673_s14  ;;  %v685_v4 = vmov 0.0   ;;  %v686_v5 = vmov 0   ;;  %v280_v7 = vld [vmem:[%s218_s24] sm:$0xf]  ;;  %p264_p6 = scmp.lt.s32.totalorder %s673_s14, 1 }
  0x30   : > { %v281_v8 = vld [vmem:[%s228_s27] sm:$0xf]  ;;  %vm687_vm3 = vmmov 1   ;;  %vm322_vm7 = vcmask 1040384   ;;  %vm340_vm8 = vcmask 0  }
  0x31   : > { %vm793_vm0 = vcmp.lt.s32.totalorder %v274_v0, 512  ;;  %v284_v3 = vshrl.u32 %v274_v0, 7  ;;  %vm287_vm2 = vcmp.ne.f32.partialorder %v281_v8, %v281_v8  ;;  %v294_v11 = vsub.f32 %v280_v7, %v281_v8  ;;  %s850_s14 = smov (!%p264_p6, %s673_s14), 1 }
  0x32   : > { %278 = vst.msk [vmem:[#allocation2] sm:$0xf] %vm793_vm0, %v685_v4  ;;  %vm288_vm4 = vmxor %vm287_vm2, %vm687_vm3  ;;  %s266_s28 = scalar_lea.vmem %s837_s2, %s850_s14  ;;  %s269_s5 = scalar_lea.vmem %s838_s3, %s850_s14 }
  0x33   : > { %279 = vst.msk [vmem:[#allocation3] sm:$0xf] %vm793_vm0, %v686_v5  ;;  %v286_v6 = vadd.s32 %v285_v1, %v284_v3 }
  0x35   : > { %vm289_vm1 = vcmp.lt.s32.totalorder %v286_v6, 1 }
  0x36   : > { %v290_v9 = vsel %vm289_vm1, 1, %v686_v5 }
  0x37   : > { %v291_v10 = vperm.slane %v290_v9, 0 }
  0x39   : > { %vm292_vm5 = vcmp.ne.s32.totalorder %v291_v10, 0  ;;  %v296_v14 = vld [vmem:[#allocation2] sm:$0xf] }
  0x3a   : > { %vm293_vm6 = vmand %vm288_vm4, %vm292_vm5  ;;  %v305_v12 = vld [vmem:[#allocation3] sm:$0xf] }
  0x3b   : > { %v295_v13 = vsel %vm293_vm6, %v294_v11, 0.0  ;;  %v306_v15 = vsel %vm293_vm6, 1, %v686_v5 }
  0x3c   : > { %v297_v16 = vmul.f32 %v295_v13, %v295_v13  ;;  %v307_v17 = vadd.s32 %v306_v15, %v305_v12 }
  0x3e   : > { %v299_v18 = vadd.f32 %v297_v16, %v296_v14  ;;  %308 = vst.msk [vmem:[#allocation3] sm:$0xf] %vm793_vm0, %v307_v17 }
  0x40   : > { %304 = vst.msk [vmem:[#allocation2] sm:$0xf] %vm793_vm0, %v299_v18 }
  0x45   : > { %v342_v19 = vld [vmem:[#allocation3] sm:$0xf] }
  0x46   : > { %v343_v20 = vperm.slane %v342_v19, 0  ;;  %v344_v21 = vperm.slane %v342_v19, 1  ;;  %v345_v22 = vperm.slane %v342_v19, 2  ;;  %v346_v23 = vperm.slane %v342_v19, 3 }
  0x47   : > { %v312_v24 = vld [vmem:[#allocation2] sm:$0xf] }
  0x48   : > { %v347_v25 = vsel %vm322_vm7, %v343_v20, 0  ;;  %v348_v26 = vsel %vm322_vm7, %v344_v21, 0  ;;  %v349_v27 = vsel %vm322_vm7, %v345_v22, 0  ;;  %v350_v28 = vsel %vm322_vm7, %v346_v23, 0 }
  0x49   : > { %v351_v29 = vadd.s32 %v348_v26, %v347_v25  ;;  %v352_v30 = vadd.s32 %v350_v28, %v349_v27  ;;  %v314_v31 = vperm.slane %v312_v24, 0  ;;  %v315_v32 = vperm.slane %v312_v24, 1 }
  0x4a   : > { %v316_v33 = vperm.slane %v312_v24, 2  ;;  %v317_v34 = vperm.slane %v312_v24, 3 }
  0x4b   : > { %v353_v35 = vadd.s32 %v352_v30, %v351_v29  ;;  %v323_v36 = vsel %vm322_vm7, %v314_v31, 0.0  ;;  %v324_v37 = vsel %vm322_vm7, %v315_v32, 0.0 }
  0x4c   : > { %v325_v38 = vadd.f32 %v324_v37, %v323_v36  ;;  %v326_v39 = vsel %vm322_vm7, %v316_v33, 0.0  ;;  %v328_v41 = vsel %vm322_vm7, %v317_v34, 0.0 }
  0x4d   : > { %v355_v40 = vshrl.u32 %v353_v35, 16  ;;  %v354_v45 = vand.u32 65535, %v353_v35 }
  0x4e   : > { %v327_v42 = vadd.f32 %v326_v39, %v325_v38 }
  0x4f   : > { %v357_v43 = vcvt.s32.f32 %v355_v40  ;;  %v356_v46 = vcvt.s32.f32 %v354_v45 }
  0x50   : > { %v329_v44 = vadd.f32 %v328_v41, %v327_v42 }
  0x51   : > { %360 = vadd.xlane.f32.xlu0 %v357_v43 }
  0x52   : > { %330 = vadd.xlane.f32.xlu1 %v329_v44 }
  0x59   : > { %358 = vadd.xlane.f32.xlu0 %v356_v46 }
  0xc4   : > { %v361_v47 = vpop.xlane.xlu0 %360 }
  0xc5   : > { %v331_v48 = vpop.xlane.xlu1 %330  ;;  %v363_v51 = vcvt.f32.s32 %v361_v47 }
  0xc6   : > { %v332_v49 = vrot.slane %v331_v48, 4 }
  0xc7   : > { %v364_v55 = vshll.u32 %v363_v51, 16 }
  0xc8   : > { %v333_v50 = vadd.f32 %v332_v49, %v331_v48 }
  0xca   : > { %v334_v52 = vrot.slane %v333_v50, 2 }
  0xcc   : > { %v359_v53 = vpop.xlane.xlu0 %358  ;;  %v335_v54 = vadd.f32 %v334_v52, %v333_v50 }
  0xcd   : > { %v362_v56 = vcvt.f32.s32 %v359_v53 }
  0xce   : > { %v336_v57 = vrot.slane %v335_v54, 1 }
  0xcf   : > { %v365_v58 = vadd.s32 %v364_v55, %v362_v56 }
  0xd0   : > { %v337_v59 = vadd.f32 %v336_v57, %v335_v54 }
  0xd1   : > { %v366_v60 = vrot.slane %v365_v58, 4 }
  0xd2   : > { %503 = vpush %v337_v59 }
  0xd3   : > { %v367_v61 = vadd.s32 %v366_v60, %v365_v58 }
  0xd5   : > { %v368_v62 = vrot.slane %v367_v61, 2 }
  0xd7   : > { %v369_v63 = vadd.s32 %v368_v62, %v367_v61 }
  0xd9   : > { %v370_v0 = vrot.slane %v369_v63, 1 }
  0xdb   : > { %v371_v1 = vadd.s32 %v370_v0, %v369_v63 }
  0xdd   : > { %505 = vpush %v371_v1 }
 0x103   : > { %s504_s29 = spop %503 }
 0x104   : > { %v339_v2 = vstv %s504_s29 }
 0x105   : > { %341 = vst.msk [vmem:[%s266_s28] sm:$0x1] %vm340_vm8, %v339_v2 }
 0x10e   : > { %s506_s6 = spop %505 }
 0x10f   : > { %v373_v3 = vstv %s506_s6 }
 0x110   : > { %374 = vst.msk [vmem:[%s269_s5] sm:$0x1] %vm340_vm8, %v373_v3 }
 0x111 PF: > { %s20_s16 = sadd.s32 1, %s681_s16   ;;  %s844_s12 = smov %s669_s13 }
 0x112   : > { %p17_p8 = scmp.ge.s32.totalorder %s20_s16, 4   ;;  %s825_s13 = smov 0  }
 0x113   : > { %s845_s14 = smov %s677_s15  ;;  %s846_s15 = smov %s848_s18 }
 0x114   :  { %19 = sbr.rel (!%p17_p8) target bundleno = 6 (0x6), region = 101 }
 0x119   :  { %404 = vsyncpa [#allocation5], 1 }
 0x11a   :  { %406 = vsyncpa [#allocation5 + $0x1], 1 }
 0x11b   :  { %407 = vsyncpa [#allocation7], 1 }
 0x11c   :  { %409 = vsyncpa [#allocation7 + $0x1], 1 }

</bundles_post_ra>
